<compile_context>
chip_gen: v7x
topology: tpu7x:2x2x1
jax: 0.10.0
libtpu: 0.0.40
codegen_flags: <defaults>
</compile_context>

<pallas_src>
import numpy as np
import jax
import jax.numpy as jnp
from jax.experimental import pallas as pl
from jax.experimental.pallas import tpu as pltpu

TWO_PI = 2.0 * np.pi

# ---------------- shared-range-reduction sincos (f32, VPU) -------------------
_TWO_OVER_PI = 0.63661977236758134308
# pi/2 split into three pieces whose products with small integers are exact
# in f32 (2x the Cephes sinf pi/4 split).
_P1 = 1.5703125
_P2 = 4.837512969970703125e-4
_P3 = 7.54978995489188216e-8
# Cephes single-precision minimax coefficients, |r| <= pi/4.
_S1, _S2, _S3 = -1.6666654611e-1, 8.3321608736e-3, -1.9515295891e-4
_C1, _C2, _C3 = 4.166664568298827e-2, -1.388731625493765e-3, 2.443315711809948e-5


def _sincos(t):
    """(sin(t), cos(t)) with ONE shared Cody-Waite range reduction.

    Accurate to a few f32 ulps for |t| up to ~2**13 (ample for time-step
    embeddings; demo args are |t| <= ~700). jnp.sin/jnp.cos would each redo
    the range reduction independently.
    """
    k = jnp.floor(t * _TWO_OVER_PI + 0.5)               # nearest quadrant index
    r = ((t - k * _P1) - k * _P2) - k * _P3             # reduced arg, |r| <~ pi/4
    r2 = r * r
    sin_r = ((_S3 * r2 + _S2) * r2 + _S1) * r2 * r + r
    cos_r = ((_C3 * r2 + _C2) * r2 + _C1) * (r2 * r2) - 0.5 * r2 + 1.0
    q = k.astype(jnp.int32) & 3                         # quadrant mod 4
    odd = (q & 1) == 1
    sin_base = jnp.where(odd, cos_r, sin_r)
    cos_base = jnp.where(odd, sin_r, cos_r)
    sin_t = jnp.where((q == 2) | (q == 3), -sin_base, sin_base)
    cos_t = jnp.where((q == 1) | (q == 2), -cos_base, cos_base)
    return sin_t, cos_t


# ------------------------------- kernel --------------------------------------
def _gfp_kernel(x_ref, w_ref, o_ref):
    # x_ref: (TB, 1) f32, w_ref: (1, Hp) f32, o_ref: (TB, 2*Hp)
    Hp = w_ref.shape[-1]
    # Same rounding order as the PyTorch forward: (x * W) * 2*pi.
    proj = (x_ref[...] * w_ref[...]) * TWO_PI           # (TB, Hp) VPU broadcast
    s, c = _sincos(proj)
    # Hp % 128 == 0, so both slabs start on a 128-lane boundary -> unmasked vst.
    o_ref[:, :Hp] = s.astype(o_ref.dtype)
    o_ref[:, Hp:] = c.astype(o_ref.dtype)


# ------------------------------ wrapper ---------------------------------------
def _round_up(n, m):
    return ((n + m - 1) // m) * m


def _choose_tile_b(batch, h_padded, out_itemsize):
    """Rows per batch tile.

    Aim for >= 8 grid steps (software-pipelined HBM writeback + 2-TC sharding
    on v7x) while keeping the double-buffered output footprint
    (2 bufs * TB * 2*Hp * itemsize) under ~12 MiB, which fits v5e's 16 MiB
    scoped-VMEM default (and v6e/v7x's 32 MiB) with headroom for x / W buffers.
    """
    if batch <= 8:
        return batch
    row_bytes = 2 * h_padded * out_itemsize
    cap_rows = max(8, ((12 << 20) // (2 * row_bytes)) // 8 * 8)
    tb = _round_up(pl.cdiv(batch, 8), 8)                 # target >= 8 steps
    return max(8, min(tb, 1024, cap_rows))


def gaussian_fourier_projection(x, W, *, out_dtype=jnp.float32):
    """x: (B,) f32 time steps, W: (H,) fixed Gaussian weights -> (B, 2*H).

    out_dtype=jnp.bfloat16 is an opt-in writeback-bandwidth optimization for
    v5e/v6e (compute stays f32); the f32 default matches the PyTorch forward.
    """
    B = x.shape[0]
    H = W.shape[0]
    Hp = _round_up(max(H, 1), 128)                       # lane-dense output slab
    x2d = x.reshape(B, 1).astype(jnp.float32)
    w2d = jnp.zeros((1, Hp), jnp.float32).at[:, :H].set(
        W.reshape(1, H).astype(jnp.float32))

    itemsize = jnp.dtype(out_dtype).itemsize
    TB = _choose_tile_b(B, Hp, itemsize)
    grid = (pl.cdiv(B, TB),)

    # sin/cos are VPU polynomial sequences on TPU -> count them as flops.
    cost = pl.CostEstimate(
        flops=34 * B * Hp,
        transcendentals=0,
        bytes_accessed=4 * B + 4 * Hp + 2 * B * Hp * itemsize,
    )

    out = pl.pallas_call(
        _gfp_kernel,
        out_shape=jax.ShapeDtypeStruct((B, 2 * Hp), out_dtype),
        grid_spec=pltpu.PrefetchScalarGridSpec(
            num_scalar_prefetch=0,
            grid=grid,
            in_specs=[
                # x tile marches down the batch axis.
                pl.BlockSpec((TB, 1), lambda i: (i, 0)),
                # W stays VMEM-resident across all grid steps.
                pl.BlockSpec((1, Hp), lambda i: (0, 0)),
            ],
            out_specs=pl.BlockSpec((TB, 2 * Hp), lambda i: (i, 0)),
        ),
        compiler_params=pltpu.CompilerParams(
            dimension_semantics=("parallel",)),
        cost_estimate=cost,
    )(x2d, w2d)

    if Hp == H:
        return out
    # TODO(synk): when H % 128 != 0 this un-pad costs one extra XLA copy; for
    # production embed dims (H a multiple of 128) this path is never taken.
    return jnp.concatenate([out[:, :H], out[:, Hp:Hp + H]], axis=-1)


if __name__ == "__main__":
    embed_dim = 32
    scale = 30.0
    batch = 8

    key = jax.random.PRNGKey(0)
    k_w, k_x = jax.random.split(key)

    # Deterministic parameter init: W ~ N(0,1) * scale, shape (embed_dim//2,)
    W = jax.random.normal(k_w, (embed_dim // 2,), dtype=jnp.float32) * scale
    # Example time-step inputs (B,)
    x = jax.random.uniform(k_x, (batch,), dtype=jnp.float32)

    out = gaussian_fourier_projection(x, W)
    out = jax.block_until_ready(out)

    # Reference (same math as the PyTorch forward).
    x_proj = x[:, None] * W[None, :] * TWO_PI
    ref = jnp.concatenate([jnp.sin(x_proj), jnp.cos(x_proj)], axis=-1)
    assert out.shape == (batch, embed_dim)
    np.testing.assert_allclose(np.asarray(out), np.asarray(ref),
                               rtol=2e-5, atol=2e-5)

    print("KERNEL_OK")
</pallas_src>

<mosaic_0001>
module attributes {stable_mosaic.version = 11 : i64} {
  func.func @_gfp_kernel(%arg0: i32, %arg1: memref<8x1xf32, #tpu.memory_space<vmem>>, %arg2: memref<1x128xf32, #tpu.memory_space<vmem>>, %arg3: memref<8x256xf32, #tpu.memory_space<vmem>>) attributes {dimension_semantics = [#tpu.dimension_semantics<parallel>], iteration_bounds = array<i64: 1>, scalar_prefetch = 0 : i64, scratch_operands = 0 : i64, tpu.core_type = #tpu.core_type<tc>, window_params = [{transform_indices = @transform_0, window_bounds = array<i64: 8, 1>}, {pipeline_mode = #tpu.pipeline_mode<synchronous>, transform_indices = @transform_1, window_bounds = array<i64: 1, 128>}, {transform_indices = @transform_2, window_bounds = array<i64: 8, 256>}]} {
    %c0 = arith.constant 0 : index
    %c0_0 = arith.constant 0 : index
    %0 = vector.load %arg1[%c0, %c0_0] : memref<8x1xf32, #tpu.memory_space<vmem>>, vector<8x1xf32>
    %c0_1 = arith.constant 0 : index
    %c0_2 = arith.constant 0 : index
    %1 = vector.load %arg2[%c0_1, %c0_2] : memref<1x128xf32, #tpu.memory_space<vmem>>, vector<1x128xf32>
    %2 = vector.broadcast %0 : vector<8x1xf32> to vector<8x128xf32>
    %3 = vector.broadcast %1 : vector<1x128xf32> to vector<8x128xf32>
    %4 = arith.mulf %2, %3 : vector<8x128xf32>
    %cst = arith.constant 6.28318548 : f32
    %5 = vector.broadcast %cst : f32 to vector<8x128xf32>
    %6 = arith.mulf %4, %5 : vector<8x128xf32>
    %cst_3 = arith.constant 0.636619746 : f32
    %7 = vector.broadcast %cst_3 : f32 to vector<8x128xf32>
    %8 = arith.mulf %6, %7 : vector<8x128xf32>
    %cst_4 = arith.constant 5.000000e-01 : f32
    %9 = vector.broadcast %cst_4 : f32 to vector<8x128xf32>
    %10 = arith.addf %8, %9 : vector<8x128xf32>
    %11 = math.floor %10 : vector<8x128xf32>
    %cst_5 = arith.constant 1.5703125 : f32
    %12 = vector.broadcast %cst_5 : f32 to vector<8x128xf32>
    %13 = arith.mulf %11, %12 : vector<8x128xf32>
    %14 = arith.subf %6, %13 : vector<8x128xf32>
    %cst_6 = arith.constant 4.83751297E-4 : f32
    %15 = vector.broadcast %cst_6 : f32 to vector<8x128xf32>
    %16 = arith.mulf %11, %15 : vector<8x128xf32>
    %17 = arith.subf %14, %16 : vector<8x128xf32>
    %cst_7 = arith.constant 7.549790e-08 : f32
    %18 = vector.broadcast %cst_7 : f32 to vector<8x128xf32>
    %19 = arith.mulf %11, %18 : vector<8x128xf32>
    %20 = arith.subf %17, %19 : vector<8x128xf32>
    %21 = arith.mulf %20, %20 : vector<8x128xf32>
    %cst_8 = arith.constant -1.95152956E-4 : f32
    %22 = vector.broadcast %cst_8 : f32 to vector<8x128xf32>
    %23 = arith.mulf %22, %21 : vector<8x128xf32>
    %cst_9 = arith.constant 0.00833216123 : f32
    %24 = vector.broadcast %cst_9 : f32 to vector<8x128xf32>
    %25 = arith.addf %23, %24 : vector<8x128xf32>
    %26 = arith.mulf %25, %21 : vector<8x128xf32>
    %cst_10 = arith.constant -0.166666552 : f32
    %27 = vector.broadcast %cst_10 : f32 to vector<8x128xf32>
    %28 = arith.addf %26, %27 : vector<8x128xf32>
    %29 = arith.mulf %28, %21 : vector<8x128xf32>
    %30 = arith.mulf %29, %20 : vector<8x128xf32>
    %31 = arith.addf %30, %20 : vector<8x128xf32>
    %cst_11 = arith.constant 2.44331568E-5 : f32
    %32 = vector.broadcast %cst_11 : f32 to vector<8x128xf32>
    %33 = arith.mulf %32, %21 : vector<8x128xf32>
    %cst_12 = arith.constant -0.00138873165 : f32
    %34 = vector.broadcast %cst_12 : f32 to vector<8x128xf32>
    %35 = arith.addf %33, %34 : vector<8x128xf32>
    %36 = arith.mulf %35, %21 : vector<8x128xf32>
    %cst_13 = arith.constant 0.0416666456 : f32
    %37 = vector.broadcast %cst_13 : f32 to vector<8x128xf32>
    %38 = arith.addf %36, %37 : vector<8x128xf32>
    %39 = arith.mulf %21, %21 : vector<8x128xf32>
    %40 = arith.mulf %38, %39 : vector<8x128xf32>
    %cst_14 = arith.constant 5.000000e-01 : f32
    %41 = vector.broadcast %cst_14 : f32 to vector<8x128xf32>
    %42 = arith.mulf %41, %21 : vector<8x128xf32>
    %43 = arith.subf %40, %42 : vector<8x128xf32>
    %cst_15 = arith.constant 1.000000e+00 : f32
    %44 = vector.broadcast %cst_15 : f32 to vector<8x128xf32>
    %45 = arith.addf %43, %44 : vector<8x128xf32>
    %46 = arith.fptosi %11 : vector<8x128xf32> to vector<8x128xi32>
    %c3_i32 = arith.constant 3 : i32
    %47 = vector.broadcast %c3_i32 : i32 to vector<8x128xi32>
    %48 = arith.andi %46, %47 : vector<8x128xi32>
    %c1_i32 = arith.constant 1 : i32
    %49 = vector.broadcast %c1_i32 : i32 to vector<8x128xi32>
    %50 = arith.andi %48, %49 : vector<8x128xi32>
    %c1_i32_16 = arith.constant 1 : i32
    %51 = vector.broadcast %c1_i32_16 : i32 to vector<8x128xi32>
    %52 = arith.cmpi eq, %50, %51 : vector<8x128xi32>
    %53 = arith.select %52, %45, %31 : vector<8x128xi1>, vector<8x128xf32>
    %54 = arith.select %52, %31, %45 : vector<8x128xi1>, vector<8x128xf32>
    %c2_i32 = arith.constant 2 : i32
    %55 = vector.broadcast %c2_i32 : i32 to vector<8x128xi32>
    %56 = arith.cmpi eq, %48, %55 : vector<8x128xi32>
    %c3_i32_17 = arith.constant 3 : i32
    %57 = vector.broadcast %c3_i32_17 : i32 to vector<8x128xi32>
    %58 = arith.cmpi eq, %48, %57 : vector<8x128xi32>
    %59 = arith.ori %56, %58 : vector<8x128xi1>
    %cst_18 = arith.constant 0.000000e+00 : f32
    %60 = vector.broadcast %cst_18 : f32 to vector<8x128xf32>
    %61 = arith.subf %60, %53 : vector<8x128xf32>
    %62 = arith.select %59, %61, %53 : vector<8x128xi1>, vector<8x128xf32>
    %c1_i32_19 = arith.constant 1 : i32
    %63 = vector.broadcast %c1_i32_19 : i32 to vector<8x128xi32>
    %64 = arith.cmpi eq, %48, %63 : vector<8x128xi32>
    %c2_i32_20 = arith.constant 2 : i32
    %65 = vector.broadcast %c2_i32_20 : i32 to vector<8x128xi32>
    %66 = arith.cmpi eq, %48, %65 : vector<8x128xi32>
    %67 = arith.ori %64, %66 : vector<8x128xi1>
    %cst_21 = arith.constant 0.000000e+00 : f32
    %68 = vector.broadcast %cst_21 : f32 to vector<8x128xf32>
    %69 = arith.subf %68, %54 : vector<8x128xf32>
    %70 = arith.select %67, %69, %54 : vector<8x128xi1>, vector<8x128xf32>
    %c0_22 = arith.constant 0 : index
    %c0_23 = arith.constant 0 : index
    %71 = vector.load %arg3[%c0_22, %c0_23] : memref<8x256xf32, #tpu.memory_space<vmem>>, vector<8x128xf32>
    tpu.vector_store %arg3[%c0_22, %c0_23], %62 {strides = array<i32>} : memref<8x256xf32, #tpu.memory_space<vmem>>, vector<8x128xf32>,
    %c0_24 = arith.constant 0 : index
    %c128 = arith.constant 128 : index
    %72 = vector.load %arg3[%c0_24, %c128] : memref<8x256xf32, #tpu.memory_space<vmem>>, vector<8x128xf32>
    tpu.vector_store %arg3[%c0_24, %c128], %70 {strides = array<i32>} : memref<8x256xf32, #tpu.memory_space<vmem>>, vector<8x128xf32>,
    return
  }
  func.func @transform_0(%arg0: i32) -> (i32, i32) {
    %c0_i32 = arith.constant 0 : i32
    %c0_i32_0 = arith.constant 0 : i32
    return %arg0, %c0_i32 : i32, i32
  }
  func.func @transform_1(%arg0: i32) -> (i32, i32) {
    %c0_i32 = arith.constant 0 : i32
    %c0_i32_0 = arith.constant 0 : i32
    %c0_i32_1 = arith.constant 0 : i32
    return %c0_i32, %c0_i32_0 : i32, i32
  }
  func.func @transform_2(%arg0: i32) -> (i32, i32) {
    %c0_i32 = arith.constant 0 : i32
    %c0_i32_0 = arith.constant 0 : i32
    return %arg0, %c0_i32 : i32, i32
  }
}

</mosaic_0001>

<bundles_post_ra>
// kernel: tpu_custom_call.1
= control target key start
LH: loop header
LB: loop body
LE: loop exit
PB: predicated region body
PF: predicated region fallthrough
CT: control target
= control target key end

     0   :  { %s149_s0 = inlined_call_operand.vmem [shape: f32[8,1], index: 0, kind: input, shape index: {}]   ;;  %s150_s1 = inlined_call_operand.vmem [shape: f32[1,128], index: 1, kind: input, shape index: {}]   ;;  %s151_s2 = inlined_call_operand.hbm [shape: f32[8,256], index: 2, kind: output, shape index: {}]  }
   0x1   :  { %v12_v0 = vld [vmem:[%s149_s0] sm:$0xff] }
   0x2   :  { %7 = vsyncpa [#allocation3], 0  ;;  %v114_v1 = vmov 0   ;;  %v84_v2 = vld [vmem:[%s150_s1] ss:$0 sm:$0xff]  ;;  %s115_s0 = smov [#allocation2]  }
   0x3   :  { %89 = vset.pattern.permute.xlu0 %v114_v1  ;;  %s76_s1 = sshll.u32 %s115_s0, 4  ;;  %s77_s1 = int_to_ptr.vmem [resolvable:$true] %s76_s1 }
   0x4   :  { %16 = vperm.xlu0 %89, %v12_v0   ;;  %s90_s13 = scalar_lea.vmem %s77_s1, 256  ;;  %p95_p1 = scmp.lt.s32.totalorder %s77_s1, %s77_s1 }
   0x5   :  { %p91_p0 = scmp.ne.s32.totalorder %s77_s1, %s90_s13  ;;  %p96_p2 = scmp.lt.s32.totalorder %s90_s13, %s90_s13 }
   0x7   :  { %p97_p3 = por %p96_p2, %p95_p1 }
   0x9   :  { %p98_p4 = pnand %p97_p3, %p91_p0 }
  0x83   :  { %v17_v3 = vpop.permute.xlu0 %16 }
  0x84   :  { %v25_v4 = vmul.f32 %v84_v2, %v17_v3 }
  0x86   :  { %v26_v5 = vmul.f32 6.2831855, %v25_v4 }
  0x88   :  { %v27_v6 = vmul.f32 0.63661975, %v26_v5 }
  0x8a   :  { %v28_v7 = vadd.f32 0.5, %v27_v6 }
  0x8c   :  { %v29_v8 = vfloor.f32 %v28_v7 }
  0x8e   :  { %v30_v9 = vmul.f32 1.5703125, %v29_v8  ;;  %v32_v11 = vmul.f32 0.0004837513, %v29_v8  ;;  %v34_v13 = vmul.f32 7.54979e-08, %v29_v8  ;;  %v85_v15 = vtrunc.f32 %v29_v8 }
  0x90   :  { %v31_v10 = vsub.f32 %v26_v5, %v30_v9  ;;  %v86_v19 = vcvt.f32.s32 %v85_v15 }
  0x92   :  { %v33_v12 = vsub.f32 %v31_v10, %v32_v11  ;;  %v54_v24 = vand.u32 3, %v86_v19 }
  0x94   :  { %v35_v14 = vsub.f32 %v33_v12, %v34_v13  ;;  %v55_v31 = vand.u32 1, %v54_v24  ;;  %vm59_vm0 = vcmp.eq.s32.totalorder %v54_v24, 2  ;;  %vm60_vm1 = vcmp.eq.s32.totalorder %v54_v24, 3 }
  0x95   :  { %vm64_vm3 = vcmp.eq.s32.totalorder %v54_v24, 1  ;;  %vm61_vm4 = vmor %vm59_vm0, %vm60_vm1 }
  0x96   :  { %v36_v16 = vmul.f32 %v35_v14, %v35_v14  ;;  %vm56_vm2 = vcmp.eq.s32.totalorder %v55_v31, 1  ;;  %vm65_vm5 = vmor %vm64_vm3, %vm59_vm0 }
  0x98   :  { %v37_v17 = vmul.f32 -0.00019515296, %v36_v16  ;;  %v44_v18 = vmul.f32 2.4433157e-05, %v36_v16  ;;  %v48_v27 = vmul.f32 %v36_v16, %v36_v16  ;;  %v50_v30 = vmul.f32 0.5, %v36_v16 }
  0x9a   :  { %v38_v20 = vadd.f32 0.008332161, %v37_v17  ;;  %v45_v21 = vadd.f32 -0.0013887316, %v44_v18 }
  0x9c   :  { %v39_v22 = vmul.f32 %v38_v20, %v36_v16  ;;  %v46_v23 = vmul.f32 %v45_v21, %v36_v16 }
  0x9e   :  { %v40_v25 = vadd.f32 -0.16666655, %v39_v22  ;;  %v47_v26 = vadd.f32 0.041666646, %v46_v23 }
  0xa0   :  { %v41_v28 = vmul.f32 %v40_v25, %v36_v16  ;;  %v49_v29 = vmul.f32 %v48_v27, %v47_v26 }
  0xa2   :  { %v42_v32 = vmul.f32 %v41_v28, %v35_v14  ;;  %v51_v33 = vsub.f32 %v49_v29, %v50_v30 }
  0xa4   :  { %v43_v34 = vadd.f32 %v42_v32, %v35_v14  ;;  %v52_v35 = vadd.f32 1.0, %v51_v33 }
  0xa6   :  { %v57_v36 = vsel %vm56_vm2, %v52_v35, %v43_v34  ;;  %v58_v37 = vsel %vm56_vm2, %v43_v34, %v52_v35 }
  0xa7   :  { %v62_v38 = vsub.f32 0.0, %v57_v36  ;;  %v66_v39 = vsub.f32 0.0, %v58_v37 }
  0xa9   :  { %v63_v40 = vsel %vm61_vm4, %v62_v38, %v57_v36  ;;  %v67_v41 = vsel %vm65_vm5, %v66_v39, %v58_v37 }
  0xaa   :  { %68 = vst [vmem:[#allocation2] sm:$0xff] %v63_v40  ;;  %69 = vst [vmem:[#allocation2 + $0x8] sm:$0xff] %v67_v41 }
  0xab   :  { %101 = shalt.err (!%p98_p4)
}
  0xac   :  { %s102_s16 = scalar_lea.hbm %s151_s2, 256 }
  0xad   :  { %p103_p5 = scmp.ne.s32.totalorder %s151_s2, %s102_s16  ;;  %p106_p6 = scmp.lt.u32.totalorder %s102_s16, %s151_s2 }
  0xaf   :  { %p108_p7 = pnand %p106_p6, %p103_p5 }
  0xb1   :  { %111 = shalt.err (!%p108_p7)
}
  0xb2   :  { %79 = dma.vmem_to_hbm [thread:$0]  %s77_s1, 256, %s151_s2, [#allocation3]  }
  0xb3   :  { %112 = dma.done.wait [#allocation3], 256  }
  0xb4   :  { %113 = vsyncadd [#allocation3], 4294967040 }
  0xb5   :  { %83 = vsyncpa [#allocation3], 1 }

</bundles_post_ra>
